<compile_context>
chip_gen: v6e
topology: v6e:2x2x1
jax: 0.10.0
libtpu: 0.0.40
codegen_flags: <defaults>
</compile_context>

<pallas_src>
import functools

import numpy as np

import jax
import jax.numpy as jnp
from jax.experimental import pallas as pl
from jax.experimental.pallas import tpu as pltpu

_NEG_MASK = -1e30  # large finite negative; avoids -inf arithmetic edge cases


def _round_up(x, m):
    return ((x + m - 1) // m) * m


def cnn_kernel(k_max, emb_ref, w_ref, mask_ref, bconv_ref, wfc_ref, bfc_ref,
               out_ref):
    """One batch tile: fused wide conv matmul -> roll/add taps -> masked
    max-over-time -> +bias -> ReLU -> FC."""
    emb = emb_ref[...]                       # (TB, S, E) bf16
    TB, S, E = emb.shape
    Fp = mask_ref.shape[-1]                  # padded fused filter count

    # Single wide MXU matmul over all taps: (TB, S, E) @ (E, k_max*Fp) -> f32.
    prod = jax.lax.dot_general(
        emb, w_ref[...],
        dimension_numbers=(((2,), (0,)), ((), ())),
        preferred_element_type=jnp.float32)   # (TB, S, k_max*Fp)

    # Tap j is the j-th lane-aligned Fp chunk, time-shifted left by j.
    # pltpu.roll (XLU) replaces the old concatenate-with-zeros shift; the
    # wrapped rows land at t >= S-j >= S-k_i+1 and are masked to -BIG below.
    acc = prod[:, :, :Fp]
    for j in range(1, k_max):
        chunk = prod[:, :, j * Fp:(j + 1) * Fp]
        acc = acc + pltpu.roll(chunk, shift=(S - j) % S, axis=1)

    # Additive validity mask (precomputed in wrapper), max over time, conv bias
    # after the pool (max_t(x)+b == max_t(x+b)), ReLU.
    pooled = jnp.max(acc + mask_ref[...], axis=1)           # (TB, Fp)
    h = jnp.maximum(pooled + bconv_ref[...], 0.0)
    # TODO(synk): nn.Dropout is identity at inference (eval mode); omitted.

    logits = jax.lax.dot_general(
        h.astype(jnp.bfloat16), wfc_ref[...],
        dimension_numbers=(((1,), (0,)), ((), ())),
        preferred_element_type=jnp.float32)                  # (TB, Cp) f32
    out_ref[...] = logits + bfc_ref[...]


def cnn_forward(sentence, params, kernel_sizes, num_filters, num_classes,
                *, batch_block=128):
    kernel_sizes = tuple(kernel_sizes)
    num_filters = tuple(num_filters)

    # Embedding gather (glue, plain JAX), in bf16 to halve HBM traffic.
    emb = params["embed"].astype(jnp.bfloat16)[sentence]   # (B, S, E) bf16
    B, S, E = emb.shape

    k_max = max(kernel_sizes)
    assert S >= k_max, f"sequence length {S} < largest kernel size {k_max}"
    f_total = sum(num_filters)
    Fp = _round_up(f_total, 128)          # lane-dense fused filter axis
    Cp = _round_up(num_classes, 128)      # lane-dense output store

    # Fused, tap-padded conv weights -> one wide RHS (E, k_max*Fp), bias (1, Fp).
    w_fused = jnp.zeros((k_max, E, Fp), jnp.bfloat16)
    b_fused = jnp.zeros((1, Fp), jnp.float32)
    off = 0
    for i, (k, f) in enumerate(zip(kernel_sizes, num_filters)):
        w_fused = w_fused.at[:k, :, off:off + f].set(
            params[f"conv{i}_w"].astype(jnp.bfloat16))
        b_fused = b_fused.at[:, off:off + f].set(params[f"conv{i}_b"])
        off += f
    w_wide = jnp.transpose(w_fused, (1, 0, 2)).reshape(E, k_max * Fp)

    # Additive validity mask (0 = valid, -BIG = t >= S-k_i+1); static config,
    # built with numpy at trace time (zero per-grid-step cost).
    mask_np = np.zeros((S, Fp), np.float32)
    off = 0
    for k, f in zip(kernel_sizes, num_filters):
        mask_np[S - k + 1:, off:off + f] = _NEG_MASK
        off += f
    mask = jnp.asarray(mask_np)

    wfc = jnp.zeros((Fp, Cp), jnp.bfloat16).at[:f_total, :num_classes].set(
        params["fc_w"].astype(jnp.bfloat16))
    bfc = jnp.zeros((1, Cp), jnp.float32).at[:, :num_classes].set(params["fc_b"])

    # VMEM limit from the chip (v5e/v6e: 128 MiB, v7x: 64 MiB per TC).
    try:
        vmem_phys = int(pltpu.get_tpu_info().vmem_capacity_bytes)
    except Exception:  # conservative fallback (v7x-sized)
        vmem_phys = 64 * 1024 * 1024
    vmem_limit = min(96 * 1024 * 1024, (vmem_phys * 3) // 4)

    # Batch tile: multiple of 8, grid >= 2 when B allows (megacore), and sized
    # so resident buffers (incl. the (TB, S, k_max*Fp) f32 matmul result) fit.
    per_row_bytes = (2 * S * E * 2            # double-buffered emb block (bf16)
                     + 2 * Cp * 4             # double-buffered out block (f32)
                     + S * k_max * Fp * 4     # wide matmul result (f32)
                     + 2 * S * Fp * 4)        # acc / masked temporaries (f32)
    const_bytes = (E * k_max * Fp * 2 + S * Fp * 4 + Fp * Cp * 2
                   + (Fp + Cp) * 4)
    budget = (vmem_limit * 3) // 4
    tb_vmem = max(8, ((budget - const_bytes) // per_row_bytes) // 8 * 8)
    tb_mc = _round_up(pl.cdiv(B, 2), 8)       # grid >= 2 when B > 8
    TB = max(8, min(int(batch_block), tb_vmem, tb_mc))
    B_pad = _round_up(B, TB)
    if B_pad != B:
        emb = jnp.pad(emb, ((0, B_pad - B), (0, 0), (0, 0)))

    kernel = functools.partial(cnn_kernel, k_max)
    const = dict(pipeline_mode=pl.Buffered(1))   # single buffer for constants
    out_padded = pl.pallas_call(
        kernel,
        out_shape=jax.ShapeDtypeStruct((B_pad, Cp), jnp.float32),
        grid=(B_pad // TB,),
        in_specs=[
            pl.BlockSpec((TB, S, E), lambda b: (b, 0, 0)),             # emb
            pl.BlockSpec((E, k_max * Fp), lambda b: (0, 0), **const),  # conv W
            pl.BlockSpec((S, Fp), lambda b: (0, 0), **const),          # mask
            pl.BlockSpec((1, Fp), lambda b: (0, 0), **const),          # conv b
            pl.BlockSpec((Fp, Cp), lambda b: (0, 0), **const),         # fc W
            pl.BlockSpec((1, Cp), lambda b: (0, 0), **const),          # fc b
        ],
        out_specs=pl.BlockSpec((TB, Cp), lambda b: (b, 0)),
        compiler_params=pltpu.CompilerParams(
            dimension_semantics=("parallel",),
            vmem_limit_bytes=int(vmem_limit)),
    )(emb, w_wide, mask, b_fused, wfc, bfc)

    return out_padded[:B, :num_classes]


def cnn_reference(sentence, params, kernel_sizes, num_filters, num_classes):
    """Pure-JAX reference mirroring the torch forward (same bf16 inputs)."""
    emb = params["embed"].astype(jnp.bfloat16)[sentence]    # (B, S, E)
    B, S, E = emb.shape
    feats = []
    for i, (k, f) in enumerate(zip(kernel_sizes, num_filters)):
        w = params[f"conv{i}_w"].astype(jnp.bfloat16)        # (k, E, f)
        b = params[f"conv{i}_b"]                             # (1, f)
        L = S - k + 1
        acc = jnp.zeros((B, L, f), jnp.float32)
        for j in range(k):
            acc = acc + jax.lax.dot_general(
                emb[:, j:j + L, :], w[j],
                dimension_numbers=(((2,), (0,)), ((), ())),
                preferred_element_type=jnp.float32)
        acc = acc + b.reshape(1, 1, f)
        feats.append(jnp.max(acc, axis=1))                   # max over time
    h = jnp.maximum(jnp.concatenate(feats, axis=1), 0.0)     # ReLU
    wfc = params["fc_w"].astype(jnp.bfloat16)
    out = jax.lax.dot_general(
        h.astype(jnp.bfloat16), wfc,
        dimension_numbers=(((1,), (0,)), ((), ())),
        preferred_element_type=jnp.float32)
    return out + params["fc_b"]


def init_params(key, nwords, embed_dim, num_filters, kernel_sizes, num_classes):
    n_conv = len(kernel_sizes)
    keys = jax.random.split(key, 2 + 2 * n_conv)
    params = {}
    # nn.init.uniform_(-0.25, 0.25) on the embedding table
    params["embed"] = jax.random.uniform(
        keys[0], (nwords, embed_dim), jnp.float32, -0.25, 0.25)
    # Conv1d default (kaiming-uniform-style bound), stored as (k, E, F)
    for i, (f, k) in enumerate(zip(num_filters, kernel_sizes)):
        fan_in = embed_dim * k
        bound = 1.0 / float(fan_in) ** 0.5
        params[f"conv{i}_w"] = jax.random.uniform(
            keys[1 + 2 * i], (k, embed_dim, f), jnp.float32, -bound, bound)
        params[f"conv{i}_b"] = jax.random.uniform(
            keys[2 + 2 * i], (1, f), jnp.float32, -bound, bound)
    tot_f = sum(num_filters)
    # xavier_uniform_ on the FC weight, stored transposed as (tot_f, C)
    limit = (6.0 / (tot_f + num_classes)) ** 0.5
    params["fc_w"] = jax.random.uniform(
        keys[-1], (tot_f, num_classes), jnp.float32, -limit, limit)
    params["fc_b"] = jnp.zeros((1, num_classes), jnp.float32)
    return params


if __name__ == "__main__":
    nwords = 100
    embed_dim = 32
    num_filters = (8, 8, 8)
    kernel_sizes = (3, 4, 5)
    num_classes = 4
    batch, seq = 16, 16         # batch_block=8 -> grid of 2 (exercises pipeline)

    root = jax.random.PRNGKey(0)
    k_params, k_sent = jax.random.split(root)
    params = init_params(
        k_params, nwords, embed_dim, num_filters, kernel_sizes, num_classes)
    sentence = jax.random.randint(k_sent, (batch, seq), 0, nwords, dtype=jnp.int32)

    fwd = jax.jit(functools.partial(
        cnn_forward, kernel_sizes=kernel_sizes, num_filters=num_filters,
        num_classes=num_classes, batch_block=8))
    out = fwd(sentence, params)
    jax.block_until_ready(out)
    assert out.shape == (batch, num_classes)

    ref = cnn_reference(sentence, params, kernel_sizes, num_filters, num_classes)
    max_err = float(jnp.max(jnp.abs(out - ref)))
    assert jnp.allclose(out, ref, atol=2e-2, rtol=2e-2), max_err
    print("KERNEL_OK")
</pallas_src>

<mosaic_0001>
module attributes {stable_mosaic.version = 11 : i64} {
  func.func @cnn_kernel(%arg0: i32, %arg1: memref<8x16x32xbf16, #tpu.memory_space<vmem>>, %arg2: memref<32x640xbf16, #tpu.memory_space<vmem>>, %arg3: memref<16x128xf32, #tpu.memory_space<vmem>>, %arg4: memref<1x128xf32, #tpu.memory_space<vmem>>, %arg5: memref<128x128xbf16, #tpu.memory_space<vmem>>, %arg6: memref<1x128xf32, #tpu.memory_space<vmem>>, %arg7: memref<8x128xf32, #tpu.memory_space<vmem>>) attributes {dimension_semantics = [#tpu.dimension_semantics<parallel>], iteration_bounds = array<i64: 2>, scalar_prefetch = 0 : i64, scratch_operands = 0 : i64, tpu.core_type = #tpu.core_type<tc>, window_params = [{transform_indices = @transform_0, window_bounds = array<i64: 8, 16, 32>}, {pipeline_mode = #tpu.pipeline_mode<synchronous>, transform_indices = @transform_1, window_bounds = array<i64: 32, 640>}, {pipeline_mode = #tpu.pipeline_mode<synchronous>, transform_indices = @transform_2, window_bounds = array<i64: 16, 128>}, {pipeline_mode = #tpu.pipeline_mode<synchronous>, transform_indices = @transform_3, window_bounds = array<i64: 1, 128>}, {pipeline_mode = #tpu.pipeline_mode<synchronous>, transform_indices = @transform_4, window_bounds = array<i64: 128, 128>}, {pipeline_mode = #tpu.pipeline_mode<synchronous>, transform_indices = @transform_5, window_bounds = array<i64: 1, 128>}, {transform_indices = @transform_6, window_bounds = array<i64: 8, 128>}]} {
    %c0 = arith.constant 0 : index
    %c0_0 = arith.constant 0 : index
    %c0_1 = arith.constant 0 : index
    %0 = vector.load %arg1[%c0, %c0_0, %c0_1] : memref<8x16x32xbf16, #tpu.memory_space<vmem>>, vector<8x16x32xbf16>
    %c0_2 = arith.constant 0 : index
    %c0_3 = arith.constant 0 : index
    %1 = vector.load %arg2[%c0_2, %c0_3] : memref<32x640xbf16, #tpu.memory_space<vmem>>, vector<32x640xbf16>
    %cst = arith.constant dense<0.000000e+00> : vector<8x16x640xf32>
    %2 = tpu.matmul %0, %1, %cst {dimension_numbers = #tpu.dot_dimension_numbers<[2], [0], [0, 1], [1], [0, 0, 0, 1, 1, 1], [], []>} : vector<8x16x32xbf16>, vector<32x640xbf16>, vector<8x16x640xf32> -> vector<8x16x640xf32>
    %3 = vector.extract_strided_slice %2 {offsets = [0, 0, 0], sizes = [8, 16, 128], strides = [1, 1, 1]} : vector<8x16x640xf32> to vector<8x16x128xf32>
    %4 = vector.extract_strided_slice %2 {offsets = [0, 0, 128], sizes = [8, 16, 128], strides = [1, 1, 1]} : vector<8x16x640xf32> to vector<8x16x128xf32>
    %c15_i32 = arith.constant 15 : i32
    %5 = tpu.dynamic_rotate %4 by %c15_i32 dim 1 : vector<8x16x128xf32>, i32 -> vector<8x16x128xf32>
    %6 = arith.addf %3, %5 : vector<8x16x128xf32>
    %7 = vector.extract_strided_slice %2 {offsets = [0, 0, 256], sizes = [8, 16, 128], strides = [1, 1, 1]} : vector<8x16x640xf32> to vector<8x16x128xf32>
    %c14_i32 = arith.constant 14 : i32
    %8 = tpu.dynamic_rotate %7 by %c14_i32 dim 1 : vector<8x16x128xf32>, i32 -> vector<8x16x128xf32>
    %9 = arith.addf %6, %8 : vector<8x16x128xf32>
    %10 = vector.extract_strided_slice %2 {offsets = [0, 0, 384], sizes = [8, 16, 128], strides = [1, 1, 1]} : vector<8x16x640xf32> to vector<8x16x128xf32>
    %c13_i32 = arith.constant 13 : i32
    %11 = tpu.dynamic_rotate %10 by %c13_i32 dim 1 : vector<8x16x128xf32>, i32 -> vector<8x16x128xf32>
    %12 = arith.addf %9, %11 : vector<8x16x128xf32>
    %13 = vector.extract_strided_slice %2 {offsets = [0, 0, 512], sizes = [8, 16, 128], strides = [1, 1, 1]} : vector<8x16x640xf32> to vector<8x16x128xf32>
    %c12_i32 = arith.constant 12 : i32
    %14 = tpu.dynamic_rotate %13 by %c12_i32 dim 1 : vector<8x16x128xf32>, i32 -> vector<8x16x128xf32>
    %15 = arith.addf %12, %14 : vector<8x16x128xf32>
    %c0_4 = arith.constant 0 : index
    %c0_5 = arith.constant 0 : index
    %16 = vector.load %arg3[%c0_4, %c0_5] : memref<16x128xf32, #tpu.memory_space<vmem>>, vector<16x128xf32>
    %17 = vector.shape_cast %16 : vector<16x128xf32> to vector<1x16x128xf32>
    %18 = vector.broadcast %17 : vector<1x16x128xf32> to vector<8x16x128xf32>
    %19 = arith.addf %15, %18 : vector<8x16x128xf32>
    %cst_6 = arith.constant dense<0xFF800000> : vector<8x128xf32>
    %20 = vector.multi_reduction <maximumf>, %19, %cst_6 [1] : vector<8x16x128xf32> to vector<8x128xf32>
    %c0_7 = arith.constant 0 : index
    %c0_8 = arith.constant 0 : index
    %21 = vector.load %arg4[%c0_7, %c0_8] : memref<1x128xf32, #tpu.memory_space<vmem>>, vector<1x128xf32>
    %22 = vector.broadcast %21 : vector<1x128xf32> to vector<8x128xf32>
    %23 = arith.addf %20, %22 : vector<8x128xf32>
    %cst_9 = arith.constant 0.000000e+00 : f32
    %24 = vector.broadcast %cst_9 : f32 to vector<8x128xf32>
    %25 = arith.maximumf %23, %24 : vector<8x128xf32>
    %26 = arith.truncf %25 : vector<8x128xf32> to vector<8x128xbf16>
    %c0_10 = arith.constant 0 : index
    %c0_11 = arith.constant 0 : index
    %27 = vector.load %arg5[%c0_10, %c0_11] : memref<128x128xbf16, #tpu.memory_space<vmem>>, vector<128x128xbf16>
    %cst_12 = arith.constant dense<0.000000e+00> : vector<8x128xf32>
    %28 = tpu.matmul %26, %27, %cst_12 {dimension_numbers = #tpu.dot_dimension_numbers<[1], [0], [0], [1], [0, 0, 1, 1], [], []>} : vector<8x128xbf16>, vector<128x128xbf16>, vector<8x128xf32> -> vector<8x128xf32>
    %c0_13 = arith.constant 0 : index
    %c0_14 = arith.constant 0 : index
    %29 = vector.load %arg6[%c0_13, %c0_14] : memref<1x128xf32, #tpu.memory_space<vmem>>, vector<1x128xf32>
    %30 = vector.broadcast %29 : vector<1x128xf32> to vector<8x128xf32>
    %31 = arith.addf %28, %30 : vector<8x128xf32>
    %c0_15 = arith.constant 0 : index
    %c0_16 = arith.constant 0 : index
    %32 = vector.load %arg7[%c0_15, %c0_16] : memref<8x128xf32, #tpu.memory_space<vmem>>, vector<8x128xf32>
    tpu.vector_store %arg7[%c0_15, %c0_16], %31 {strides = array<i32>} : memref<8x128xf32, #tpu.memory_space<vmem>>, vector<8x128xf32>,
    return
  }
  func.func @transform_0(%arg0: i32) -> (i32, i32, i32) {
    %c0_i32 = arith.constant 0 : i32
    %c0_i32_0 = arith.constant 0 : i32
    %c0_i32_1 = arith.constant 0 : i32
    return %arg0, %c0_i32, %c0_i32_0 : i32, i32, i32
  }
  func.func @transform_1(%arg0: i32) -> (i32, i32) {
    %c0_i32 = arith.constant 0 : i32
    %c0_i32_0 = arith.constant 0 : i32
    %c0_i32_1 = arith.constant 0 : i32
    return %c0_i32, %c0_i32_0 : i32, i32
  }
  func.func @transform_2(%arg0: i32) -> (i32, i32) {
    %c0_i32 = arith.constant 0 : i32
    %c0_i32_0 = arith.constant 0 : i32
    %c0_i32_1 = arith.constant 0 : i32
    return %c0_i32, %c0_i32_0 : i32, i32
  }
  func.func @transform_3(%arg0: i32) -> (i32, i32) {
    %c0_i32 = arith.constant 0 : i32
    %c0_i32_0 = arith.constant 0 : i32
    %c0_i32_1 = arith.constant 0 : i32
    return %c0_i32, %c0_i32_0 : i32, i32
  }
  func.func @transform_4(%arg0: i32) -> (i32, i32) {
    %c0_i32 = arith.constant 0 : i32
    %c0_i32_0 = arith.constant 0 : i32
    %c0_i32_1 = arith.constant 0 : i32
    return %c0_i32, %c0_i32_0 : i32, i32
  }
  func.func @transform_5(%arg0: i32) -> (i32, i32) {
    %c0_i32 = arith.constant 0 : i32
    %c0_i32_0 = arith.constant 0 : i32
    %c0_i32_1 = arith.constant 0 : i32
    return %c0_i32, %c0_i32_0 : i32, i32
  }
  func.func @transform_6(%arg0: i32) -> (i32, i32) {
    %c0_i32 = arith.constant 0 : i32
    %c0_i32_0 = arith.constant 0 : i32
    return %arg0, %c0_i32 : i32, i32
  }
}

</mosaic_0001>

<bundles_post_ra>
// kernel: cnn_forward.1
= control target key start
LH: loop header
LB: loop body
LE: loop exit
PB: predicated region body
PF: predicated region fallthrough
CT: control target
= control target key end

     0   :  { %s1445_s21 = smov 0   ;;  %s1880_s0 = inlined_call_operand.vmem [shape: bf16[16,16,32], index: 0, kind: input, shape index: {}]   ;;  %s1881_s1 = inlined_call_operand.vmem [shape: bf16[32,640], index: 1, kind: input, shape index: {}]   ;;  %s1882_s2 = inlined_call_operand.vmem [shape: f32[16,128], index: 2, kind: input, shape index: {}]   ;;  %s1883_s3 = inlined_call_operand.vmem [shape: f32[1,128], index: 3, kind: input, shape index: {}]   ;;  %s1884_s4 = inlined_call_operand.vmem [shape: bf16[128,128], index: 4, kind: input, shape index: {}]   ;;  %s1885_s5 = inlined_call_operand.vmem [shape: f32[1,128], index: 5, kind: input, shape index: {}]   ;;  %s1886_s6 = inlined_call_operand.vmem [shape: f32[16,128], index: 6, kind: output, shape index: {}]  }
   0x1 LB: > { %s1451_s22 = sadd.s32 4294967295, %s1405_s21   ;;  %p1235_p0 = scmp.ge.s32.totalorder %s1405_s21, 1  ;;  %s1405_s21 = sphi %s1445_s21, %s16_s21  }
   0x2   : > { %p214_p1 = scmp.lt.s32.totalorder %s1405_s21, 3 }
   0x4   : > { %p215_p2 = pnand %p1235_p0, %p214_p1 }
   0x5   : > { %s1236_s25 = sshll.u32 (!%p215_p2), %s1451_s22, 3  ;;  %p251_p4 = scmp.lt.s32.totalorder (!%p215_p2), %s1451_s22, 1 }
   0x6   : > { %218 = sbr.rel (%p215_p2) target bundleno = 539 (0x21b), region = 44  ;;  %p245_p3 = scmp.lt.s32.totalorder (!%p215_p2), %s1236_s25, 15 }
   0xb   : > { %v1369_v0 = vld [vmem:[%s1881_s1 + $0x2c] ss:$20 sps:$4 sm:$0xff]   ;;  %v1371_v1 = vld [vmem:[%s1881_s1 + $0x28] ss:$20 sps:$4 sm:$0xff]   ;;  %v1407_v2 = vmov 0   ;;  %s1888_s25 = smov (!%p245_p3, %s1236_s25), 15  ;;  %v740_v28 = vlaneseq }
   0xc   : > { %433 = vmatprep.mubr.bf16.mxu0 %v1407_v2  ;;  %503 = vmatprep.mubr.bf16.mxu1 %v1407_v2  ;;  %v1372_v3 = vld [vmem:[%s1881_s1 + $0x4] ss:$20 sps:$4 sm:$0xff]   ;;  %v1374_v4 = vld [vmem:[%s1881_s1] ss:$20 sps:$4 sm:$0xff]   ;;  %s1294_s12 = sshll.u32 %s1888_s25, 3  ;;  %vm376_vm0 = vcmask 261120  }
   0xd   : > { %413 = vmatprep.subr.bf16.mxu0 %v1369_v0  ;;  %1354 = vmatprep.subr.bf16.mxu1 %v1369_v0  ;;  %v1379_v5 = vld [vmem:[%s1881_s1 + $0x34] ss:$20 sps:$4 sm:$0xff]   ;;  %v1380_v6 = vld [vmem:[%s1881_s1 + $0x38] ss:$20 sps:$4 sm:$0xff]   ;;  %v1377_v7 = vld [vmem:[%s1881_s1 + $0x30] ss:$20 sps:$4 sm:$0xff]   ;;  %s1482_s17 = scalar_lea.vmem %s1880_s0, %s1294_s12 }
   0xe   : > { %414 = vmatpush1.bf16.msra.mxu0 %v1371_v1  ;;  %1356 = vmatpush1.bf16.msra.mxu1 %v1371_v1  ;;  %v1383_v8 = vld [vmem:[%s1881_s1 + $0xc] ss:$20 sps:$4 sm:$0xff]   ;;  %v1376_v10 = vld [vmem:[%s1482_s17 + $0x38] sm:$0xff]   ;;  %v1387_v12 = vld [vmem:[%s1881_s1 + $0x10] ss:$20 sps:$4 sm:$0xff]   ;;  %v1408_v20 = vmov 0.0  }
   0xf   : > { %415 = vmatprep.subr.bf16.mxu0 %v1372_v3  ;;  %1355 = vmatprep.subr.bf16.mxu1 %v1372_v3  ;;  %v1375_v9 = vld [vmem:[%s1482_s17] sm:$0xff]   ;;  %v1381_v11 = vld [vmem:[%s1881_s1 + $0x8] ss:$20 sps:$4 sm:$0xff]   ;;  %v1385_v14 = vld [vmem:[%s1482_s17 + $0x10] sm:$0xff]   ;;  %vm1409_vm1 = vmmov 0   ;;  %v1563_v33 = vshrl.u32 %v740_v28, 7 }
  0x10   : > { %v1384_v13 = vld [vmem:[%s1482_s17 + $0x8] sm:$0xff]   ;;  %v1386_v15 = vld [vmem:[%s1482_s17 + $0x18] sm:$0xff]   ;;  %v1388_v16 = vld [vmem:[%s1482_s17 + $0x20] sm:$0xff]   ;;  %vm1067_vm6 = vcmask 1041409   ;;  %vm1070_vm7 = vcmask 1042434   ;;  %vm1073_vm8 = vcmask 1043459  }
  0x11   : > { %v1389_v17 = vld [vmem:[%s1482_s17 + $0x28] sm:$0xff]   ;;  %v1390_v18 = vld [vmem:[%s1482_s17 + $0x30] sm:$0xff]   ;;  %v1391_v19 = vld [vmem:[%s1884_s4 + $0x38] sm:$0xff]   ;;  %vm742_vm2 = vcmp.lt.s32.totalorder %v1563_v33, 7  ;;  %vm791_vm3 = vcmp.lt.s32.totalorder %v1563_v33, 6  ;;  %vm840_vm4 = vcmp.lt.s32.totalorder %v1563_v33, 5 }
  0x12   : > { %416 = vmatpush1.bf16.msra.mxu0 %v1374_v4  ;;  %1357 = vmatpush1.bf16.msra.mxu1 %v1374_v4  ;;  %v1392_v21 = vld [vmem:[%s1884_s4 + $0x30] sm:$0xff]   ;;  %v1393_v22 = vld [vmem:[%s1884_s4 + $0x28] sm:$0xff]   ;;  %v1394_v23 = vld [vmem:[%s1884_s4 + $0x20] sm:$0xff]   ;;  %vm889_vm5 = vcmp.lt.s32.totalorder %v1563_v33, 4  ;;  %vm1076_vm9 = vcmask 1044484   ;;  %vm1079_vm10 = vcmask 1045509  }
  0x13   : > { %526 = vmatprep.subr.bf16.mxu1 %v1379_v5  ;;  %1314 = vmatprep.subr.bf16.mxu0 %v1380_v6  ;;  %v1395_v24 = vld [vmem:[%s1884_s4 + $0x18] sm:$0xff]   ;;  %v1396_v25 = vld [vmem:[%s1884_s4 + $0x10] sm:$0xff]   ;;  %v1397_v26 = vld [vmem:[%s1884_s4 + $0x8] sm:$0xff]   ;;  %vm1082_vm11 = vcmask 1046534   ;;  %vm1085_vm12 = vcmask 1047559   ;;  %s1890_s22 = smov (!%p251_p4, %s1451_s22), 1 }
  0x14   : > { %v1398_v27 = vld [vmem:[%s1884_s4] sm:$0xff]   ;;  %s1239_s26 = sshll.u32 %s1890_s22, 3 }
  0x15   : > { %1258 = vmatmul.mubr.msk.bf16.vlgmr.msra.gmra.mxu0 %vm376_vm0, %v1375_v9  ;;  %1265 = vmatmul.mubr.msk.bf16.vlgmr.msra.gmra.mxu1 %vm376_vm0, %v1376_v10  ;;  %s254_s7 = scalar_lea.vmem %s1886_s6, %s1239_s26 }
  0x16   : > { %527 = vmatpush1.bf16.msra.mxu1 %v1377_v7  ;;  %1315 = vmatpush3.bf16.msra.mxu0 %v1380_v6 }
  0x17   : > { %528 = vmatprep.subr.bf16.mxu1 %v1383_v8  ;;  %443 = vmatprep.mubr.bf16.mxu0 %v1407_v2 }
  0x18   : > { %546 = vmatprep.mubr.bf16.mxu1 %v1407_v2  ;;  %1316 = vmatprep.subr.bf16.mxu0 %v1387_v12 }
  0x1a   : > { %529 = vmatpush1.bf16.msra.mxu1 %v1381_v11  ;;  %1317 = vmatpush3.bf16.msra.mxu0 %v1387_v12 }
  0x1b   : > { %1334 = vmatprep.subr.bf16.mxu1 %v1408_v20 }
  0x1d   : > { %1259 = vmatmul.mubr.msk.bf16.gmra.mxu0 %vm376_vm0, %v1384_v13  ;;  %1266 = vmatmul.mubr.msk.bf16.vlgmr.msra.gmra.mxu1 %vm376_vm0, %v1375_v9 }
  0x1e   : > { %453 = vmatprep.mubr.bf16.mxu0 %v1407_v2  ;;  %556 = vmatprep.mubr.bf16.mxu1 %v1407_v2 }
  0x1f   : > { %1335 = vmatpush3.bf16.msra.mxu1 %v1391_v19 }
  0x20   : > { %1336 = vmatprep.subr.bf16.mxu1 %v1408_v20 }
  0x23   : > { %1337 = vmatpush3.bf16.msra.mxu1 %v1392_v21 }
  0x24   : > { %1338 = vmatprep.subr.bf16.mxu1 %v1408_v20 }
  0x25   : > { %1260 = vmatmul.mubr.msk.bf16.gmra.mxu0 %vm376_vm0, %v1385_v14  ;;  %1267 = vmatmul.mubr.msk.bf16.gmra.mxu1 %vm376_vm0, %v1384_v13 }
  0x26   : > { %463 = vmatprep.mubr.bf16.mxu0 %v1407_v2  ;;  %566 = vmatprep.mubr.bf16.mxu1 %v1407_v2 }
  0x27   : > { %1339 = vmatpush3.bf16.msra.mxu1 %v1393_v22 }
  0x28   : > { %1340 = vmatprep.subr.bf16.mxu1 %v1408_v20 }
  0x2b   : > { %1341 = vmatpush3.bf16.msra.mxu1 %v1394_v23 }
  0x2c   : > { %1342 = vmatprep.subr.bf16.mxu1 %v1408_v20 }
  0x2d   : > { %1261 = vmatmul.mubr.msk.bf16.gmra.mxu0 %vm376_vm0, %v1386_v15  ;;  %1268 = vmatmul.mubr.msk.bf16.gmra.mxu1 %vm376_vm0, %v1385_v14 }
  0x2e   : > { %473 = vmatprep.mubr.bf16.mxu0 %v1407_v2  ;;  %576 = vmatprep.mubr.bf16.mxu1 %v1407_v2 }
  0x2f   : > { %1343 = vmatpush3.bf16.msra.mxu1 %v1395_v24 }
  0x30   : > { %1344 = vmatprep.subr.bf16.mxu1 %v1408_v20 }
  0x33   : > { %1345 = vmatpush3.bf16.msra.mxu1 %v1396_v25 }
  0x34   : > { %1346 = vmatprep.subr.bf16.mxu1 %v1408_v20 }
  0x35   : > { %1262 = vmatmul.mubr.msk.bf16.gmra.mxu0 %vm376_vm0, %v1388_v16  ;;  %1269 = vmatmul.mubr.msk.bf16.gmra.mxu1 %vm376_vm0, %v1386_v15 }
  0x36   : > { %483 = vmatprep.mubr.bf16.mxu0 %v1407_v2  ;;  %586 = vmatprep.mubr.bf16.mxu1 %v1407_v2 }
  0x37   : > { %1347 = vmatpush3.bf16.msra.mxu1 %v1397_v26 }
  0x38   : > { %1348 = vmatprep.subr.bf16.mxu1 %v1408_v20 }
  0x3b   : > { %1349 = vmatpush3.bf16.msra.mxu1 %v1398_v27 }
  0x3d   : > { %1263 = vmatmul.mubr.msk.bf16.gmra.mxu0 %vm376_vm0, %v1389_v17  ;;  %1270 = vmatmul.mubr.msk.bf16.gmra.mxu1 %vm376_vm0, %v1388_v16 }
  0x3e   : > { %493 = vmatprep.mubr.bf16.mxu0 %v1407_v2  ;;  %596 = vmatprep.mubr.bf16.mxu1 %v1407_v2 }
  0x45   : > { %1264 = vmatmul.mubr.msk.bf16.gmra.mxu0 %vm376_vm0, %v1390_v18  ;;  %1271 = vmatmul.mubr.msk.bf16.gmra.mxu1 %vm376_vm0, %v1389_v17 }
  0x46   : > { %606 = vmatprep.mubr.bf16.mxu1 %v1407_v2  ;;  %1318 = vmatprep.mubr.msk.bf16.mxu0 %vm376_vm0, %v1375_v9 }
  0x4d   : > { %1272 = vmatmul.mubr.msk.bf16.gmra.mxu1 %vm376_vm0, %v1390_v18  ;;  %1319 = vmatmul.mubr.msk.bf16.vlgmr.msra.gmra.mxu0 %vm376_vm0, %v1384_v13 }
  0x4e   : > { %616 = vmatprep.mubr.bf16.mxu1 %v1407_v2  ;;  %1322 = vmatprep.mubr.msk.bf16.mxu0 %vm376_vm0, %v1385_v14 }
  0x55   : > { %1273 = vmatmul.mubr.msk.bf16.gmra.mxu1 %vm376_vm0, %v1376_v10  ;;  %1323 = vmatmul.mubr.msk.bf16.gmra.mxu0 %vm376_vm0, %v1386_v15 }
  0x56   : > { %1326 = vmatprep.mubr.msk.bf16.mxu0 %vm376_vm0, %v1388_v16  ;;  %1350 = vmatprep.mubr.msk.bf16.mxu1 %vm1409_vm1, %v1408_v20 }
  0x5d   : > { %1327 = vmatmul.mubr.msk.bf16.gmra.mxu0 %vm376_vm0, %v1389_v17 }
  0x5e   : > { %1330 = vmatprep.mubr.msk.bf16.mxu0 %vm376_vm0, %v1390_v18 }
  0x65   : > { %1331 = vmatmul.mubr.msk.bf16.gmra.mxu0 %vm376_vm0, %v1376_v10 }
  0xd5   : > { %v435_v29 = vpop.f32.mrf.mxu0  ;;  %v505_v30 = vpop.f32.mrf.mxu1 }
  0xd7   : > { %v437_v31 = vpop.f32.mrf.mxu0  ;;  %v507_v32 = vpop.f32.mrf.mxu1 }
  0xd8   : > { %v731_v36 = vrot.slane %v507_v32, 1  ;;  %v724_v39 = vrot.slane %v437_v31, 1 }
  0xd9   : > { %v439_v34 = vpop.f32.mrf.mxu0  ;;  %v509_v35 = vpop.f32.mrf.mxu1 }
  0xdb   : > { %v441_v37 = vpop.f32.mrf.mxu0  ;;  %v511_v38 = vpop.f32.mrf.mxu1 }
  0xdc   : > { %v732_v40 = vrot.slane %v441_v37, 1  ;;  %v739_v41 = vrot.slane %v511_v38, 1 }
  0xdd   : > { %v445_v42 = vpop.f32.mrf.mxu0  ;;  %v548_v43 = vpop.f32.mrf.mxu1 }
  0xde   : > { %v743_v44 = vsel %vm742_vm2, %v724_v39, %v732_v40  ;;  %v751_v45 = vsel %vm742_vm2, %v732_v40, %v724_v39  ;;  %v750_v46 = vsel %vm742_vm2, %v731_v36, %v739_v41  ;;  %v758_v47 = vsel %vm742_vm2, %v739_v41, %v731_v36 }
  0xdf   : > { %v759_v48 = vadd.f32 %v743_v44, %v435_v29  ;;  %v760_v49 = vadd.f32 %v751_v45, %v439_v34  ;;  %v1574_v50 = vadd.f32 %v750_v46, %v505_v30  ;;  %v1576_v51 = vadd.f32 %v758_v47, %v509_v35  ;;  %v447_v52 = vpop.f32.mrf.mxu0  ;;  %v550_v53 = vpop.f32.mrf.mxu1 }
  0xe0   : > { %v725_v58 = vrot.slane %v447_v52, 1  ;;  %v775_v18 = vrot.slane %v548_v43, 2  ;;  %v824_v26 = vrot.slane %v550_v53, 3 }
  0xe1   : > { %v449_v54 = vpop.f32.mrf.mxu0  ;;  %v552_v55 = vpop.f32.mrf.mxu1 }
  0xe2   : > { %v783_v19 = vrot.slane %v552_v55, 2 }
  0xe3   : > { %v451_v56 = vpop.f32.mrf.mxu0  ;;  %v554_v57 = vpop.f32.mrf.mxu1 }
  0xe4   : > { %v733_v59 = vrot.slane %v451_v56, 1  ;;  %v792_v27 = vsel %vm791_vm3, %v775_v18, %v783_v19  ;;  %v832_v28 = vrot.slane %v554_v57, 3  ;;  %v800_v31 = vsel %vm791_vm3, %v783_v19, %v775_v18 }
  0xe5   : > { %v1578_v60 = vpop.f32.mrf.mxu0  ;;  %v558_v61 = vpop.f32.mrf.mxu1  ;;  %v808_v40 = vadd.f32 %v792_v27, %v759_v48  ;;  %v809_v44 = vadd.f32 %v800_v31, %v760_v49 }
  0xe6   : > { %v744_v62 = vsel %vm742_vm2, %v725_v58, %v733_v59  ;;  %v752_v63 = vsel %vm742_vm2, %v733_v59, %v725_v58  ;;  %v776_v22 = vrot.slane %v558_v61, 2  ;;  %v841_v45 = vsel %vm840_vm4, %v824_v26, %v832_v28 }
  0xe7   : > { %v761_v0 = vadd.f32 %v744_v62, %v445_v42  ;;  %v762_v1 = vadd.f32 %v752_v63, %v449_v54  ;;  %v457_v2 = vpop.f32.mrf.mxu0  ;;  %v560_v3 = vpop.f32.mrf.mxu1  ;;  %v849_v46 = vsel %vm840_vm4, %v832_v28, %v824_v26 }
  0xe8   : > { %v825_v35 = vrot.slane %v560_v3, 3  ;;  %v726_v41 = vrot.slane %v457_v2, 1  ;;  %v1657_v3 = vadd.f32 %v841_v45, %v808_v40 }
  0xe9   : > { %v1584_v4 = vpop.f32.mrf.mxu0  ;;  %v562_v5 = vpop.f32.mrf.mxu1 }
  0xea   : > { %v784_v23 = vrot.slane %v562_v5, 2  ;;  %v1659_v5 = vadd.f32 %v849_v46, %v809_v44 }
  0xeb   : > { %v461_v6 = vpop.f32.mrf.mxu0  ;;  %v564_v7 = vpop.f32.mrf.mxu1 }
  0xec   : > { %v793_v32 = vsel %vm791_vm3, %v776_v22, %v784_v23  ;;  %v734_v34 = vrot.slane %v461_v6, 1  ;;  %v801_v36 = vsel %vm791_vm3, %v784_v23, %v776_v22  ;;  %v833_v37 = vrot.slane %v564_v7, 3 }
  0xed   : > { %v1586_v8 = vpop.f32.mrf.mxu0  ;;  %v1588_v9 = vpop.f32.mrf.mxu1  ;;  %v810_v47 = vadd.f32 %v793_v32, %v761_v0  ;;  %v811_v54 = vadd.f32 %v801_v36, %v762_v1 }
  0xee   : > { %v777_v42 = vrot.slane %v1588_v9, 2  ;;  %v745_v48 = vsel %vm742_vm2, %v726_v41, %v734_v34  ;;  %v753_v55 = vsel %vm742_vm2, %v734_v34, %v726_v41  ;;  %v842_v56 = vsel %vm840_vm4, %v825_v35, %v833_v37 }
  0xef   : > { %v1590_v10 = vpop.f32.mrf.mxu0  ;;  %v1592_v11 = vpop.f32.mrf.mxu1  ;;  %v850_v57 = vsel %vm840_vm4, %v833_v37, %v825_v35  ;;  %v763_v6 = vadd.f32 %v745_v48, %v1578_v60  ;;  %v764_v7 = vadd.f32 %v753_v55, %v1584_v4 }
  0xf0   : > { %v826_v58 = vrot.slane %v1592_v11, 3  ;;  %v727_v63 = vrot.slane %v1590_v10, 1 }
  0xf1   : > { %v1594_v12 = vpop.f32.mrf.mxu0  ;;  %v572_v13 = vpop.f32.mrf.mxu1 }
  0xf2   : > { %v785_v43 = vrot.slane %v572_v13, 2  ;;  %v1663_v13 = vadd.f32 %v842_v56, %v810_v47 }
  0xf3   : > { %v1596_v14 = vpop.f32.mrf.mxu0  ;;  %v1598_v15 = vpop.f32.mrf.mxu1 }
  0xf4   : > { %v735_v49 = vrot.slane %v1596_v14, 1  ;;  %v834_v59 = vrot.slane %v1598_v15, 3  ;;  %v794_v0 = vsel %vm791_vm3, %v777_v42, %v785_v43  ;;  %v802_v10 = vsel %vm791_vm3, %v785_v43, %v777_v42 }
  0xf5   : > { %v1600_v16 = vpop.f32.mrf.mxu0  ;;  %v1602_v17 = vpop.f32.mrf.mxu1  ;;  %v812_v18 = vadd.f32 %v794_v0, %v763_v6  ;;  %v813_v28 = vadd.f32 %v802_v10, %v764_v7 }
  0xf6   : > { %v778_v1 = vrot.slane %v1602_v17, 2  ;;  %v746_v14 = vsel %vm742_vm2, %v727_v63, %v735_v49  ;;  %v1670_v17 = vadd.f32 %v850_v57, %v811_v54  ;;  %v754_v60 = vsel %vm742_vm2, %v735_v49, %v727_v63 }
  0xf7   : > { %v1604_v20 = vpop.f32.mrf.mxu0  ;;  %v1606_v21 = vpop.f32.mrf.mxu1  ;;  %v843_v4 = vsel %vm840_vm4, %v826_v58, %v834_v59  ;;  %v851_v31 = vsel %vm840_vm4, %v834_v59, %v826_v58 }
  0xf8   : > { %v728_v23 = vrot.slane %v1604_v20, 1  ;;  %v827_v32 = vrot.slane %v1606_v21, 3  ;;  %v1696_v40 = vadd.f32 %v843_v4, %v812_v18 }
  0xf9   : > { %v1609_v24 = vpop.f32.mrf.mxu0  ;;  %v1611_v25 = vpop.f32.mrf.mxu1 }
  0xfa   : > { %v786_v2 = vrot.slane %v1611_v25, 2 }
  0xfb   : > { %v1615_v29 = vpop.f32.mrf.mxu0  ;;  %v1617_v30 = vpop.f32.mrf.mxu1 }
  0xfc   : > { %v736_v15 = vrot.slane %v1615_v29, 1  ;;  %v795_v25 = vsel %vm791_vm3, %v778_v1, %v786_v2  ;;  %v765_v29 = vadd.f32 %v746_v14, %v1586_v8  ;;  %v803_v20 = vsel %vm791_vm3, %v786_v2, %v778_v1 }
  0xfd   : > { %v1626_v38 = vpop.f32.mrf.mxu0  ;;  %v1628_v39 = vpop.f32.mrf.mxu1  ;;  %v766_v8 = vadd.f32 %v754_v60, %v1594_v12  ;;  %v1715_v1 = vadd.f32 %v851_v31, %v813_v28 }
  0xfe   : > { %v779_v26 = vrot.slane %v1628_v39, 2  ;;  %v747_v36 = vsel %vm742_vm2, %v728_v23, %v736_v15  ;;  %v755_v37 = vsel %vm742_vm2, %v736_v15, %v728_v23  ;;  %v835_v39 = vrot.slane %v1617_v30, 3 }
  0xff   : > { %v1635_v52 = vpop.f32.mrf.mxu0  ;;  %v1637_v53 = vpop.f32.mrf.mxu1  ;;  %v814_v41 = vadd.f32 %v795_v25, %v765_v29  ;;  %v815_v47 = vadd.f32 %v803_v20, %v766_v8  ;;  %v767_v12 = vadd.f32 %v747_v36, %v1600_v16  ;;  %v768_v54 = vadd.f32 %v755_v37, %v1609_v24 }
 0x100   : > { %v828_v44 = vrot.slane %v1637_v53, 3  ;;  %v729_v48 = vrot.slane %v1635_v52, 1  ;;  %v844_v56 = vsel %vm840_vm4, %v827_v32, %v835_v39  ;;  %v852_v53 = vsel %vm840_vm4, %v835_v39, %v827_v32 }
 0x101   : > { %v1650_v61 = vpop.f32.mrf.mxu0  ;;  %v592_v62 = vpop.f32.mrf.mxu1  ;;  %v1723_v7 = vadd.f32 %v844_v56, %v814_v41  ;;  %v1728_v18 = vadd.f32 %v852_v53, %v815_v47 }
 0x102   : > { %v787_v27 = vrot.slane %v592_v62, 2 }
 0x103   : > { %v491_v9 = vpop.f32.mrf.mxu0  ;;  %v594_v11 = vpop.f32.mrf.mxu1 }
 0x104   : > { %v737_v21 = vrot.slane %v491_v9, 1  ;;  %v796_v45 = vsel %vm791_vm3, %v779_v26, %v787_v27  ;;  %v804_v46 = vsel %vm791_vm3, %v787_v27, %v779_v26  ;;  %v836_v30 = vrot.slane %v594_v11, 3 }
 0x105   : > { %v1676_v19 = vpop.f32.mrf.mxu0  ;;  %v598_v22 = vpop.f32.mrf.mxu1  ;;  %v816_v59 = vadd.f32 %v796_v45, %v767_v12  ;;  %v817_v62 = vadd.f32 %v804_v46, %v768_v54  ;;  %v1761_v45 = vld [vmem:[%s1882_s2 + $0x8] sm:$0xff] }
 0x106   : > { %v780_v57 = vrot.slane %v598_v22, 2  ;;  %v748_v63 = vsel %vm742_vm2, %v729_v48, %v737_v21  ;;  %v756_v52 = vsel %vm742_vm2, %v737_v21, %v729_v48  ;;  %v845_v2 = vsel %vm840_vm4, %v828_v44, %v836_v30 }
 0x107   : > { %v497_v34 = vpop.f32.mrf.mxu0  ;;  %v1686_v35 = vpop.f32.mrf.mxu1  ;;  %v853_v6 = vsel %vm840_vm4, %v836_v30, %v828_v44  ;;  %v769_v60 = vadd.f32 %v748_v63, %v1626_v38  ;;  %v770_v23 = vadd.f32 %v756_v52, %v1650_v61  ;;  %v1736_v25 = vadd.f32 %v845_v2, %v816_v59  ;;  %v1756_v44 = vld [vmem:[%s1882_s2] sm:$0xff] }
 0x108   : > { %v730_v9 = vrot.slane %v497_v34, 1  ;;  %v829_v11 = vrot.slane %v1686_v35, 3  ;;  %v1738_v26 = vadd.f32 %v853_v6, %v817_v62 }
 0x109   : > { %v1698_v42 = vpop.f32.mrf.mxu0  ;;  %v602_v43 = vpop.f32.mrf.mxu1 }
 0x10a   : > { %v788_v58 = vrot.slane %v602_v43, 2 }
 0x10b   : > { %v501_v55 = vpop.f32.mrf.mxu0  ;;  %v604_v49 = vpop.f32.mrf.mxu1 }
 0x10c   : > { %v738_v16 = vrot.slane %v501_v55, 1  ;;  %v837_v10 = vrot.slane %v604_v49, 3  ;;  %v797_v4 = vsel %vm791_vm3, %v780_v57, %v788_v58  ;;  %v805_v22 = vsel %vm791_vm3, %v788_v58, %v780_v57 }
 0x10d   : > { %v608_v0 = vpop.f32.mrf.mxu1  ;;  %v1320_v24 = vpop.f32.mrf.mxu0  ;;  %v818_v35 = vadd.f32 %v797_v4, %v769_v60  ;;  %v819_v20 = vadd.f32 %v805_v22, %v770_v23 }
 0x10e   : > { %v749_v27 = vsel %vm742_vm2, %v730_v9, %v738_v16  ;;  %v781_v31 = vrot.slane %v608_v0, 2  ;;  %v874_v32 = vrot.slane %v1320_v24, 4  ;;  %v757_v36 = vsel %vm742_vm2, %v738_v16, %v730_v9 }
 0x10f   : > { %v1726_v14 = vpop.f32.mrf.mxu1  ;;  %v661_v15 = vpop.f32.mrf.mxu0  ;;  %v846_v61 = vsel %vm840_vm4, %v829_v11, %v837_v10  ;;  %v771_v8 = vadd.f32 %v749_v27, %v1676_v19  ;;  %v854_v41 = vsel %vm840_vm4, %v837_v10, %v829_v11  ;;  %v772_v53 = vadd.f32 %v757_v36, %v1698_v42 }
 0x110   : > { %v830_v19 = vrot.slane %v1726_v14, 3  ;;  %v873_v46 = vrot.slane %v661_v15, 4  ;;  %v1771_v57 = vadd.f32 %v846_v61, %v818_v35  ;;  %v1775_v62 = vadd.f32 %v854_v41, %v819_v20 }
 0x111   : > { %v612_v28 = vpop.f32.mrf.mxu1  ;;  %v1321_v29 = vpop.f32.mrf.mxu0 }
 0x112   : > { %v789_v38 = vrot.slane %v612_v28, 2  ;;  %v882_v34 = vrot.slane %v1321_v29, 4 }
 0x113   : > { %v614_v37 = vpop.f32.mrf.mxu1  ;;  %v664_v39 = vpop.f32.mrf.mxu0 }
 0x114   : > { %v891_v21 = vsel %vm889_vm5, %v874_v32, %v882_v34  ;;  %v899_v43 = vsel %vm889_vm5, %v882_v34, %v874_v32  ;;  %v798_v48 = vsel %vm791_vm3, %v781_v31, %v789_v38  ;;  %v806_v55 = vsel %vm791_vm3, %v789_v38, %v781_v31 }
 0x115   : > { %v908_v30 = vadd.f32 %v891_v21, %v1663_v13  ;;  %v909_v47 = vadd.f32 %v899_v43, %v1670_v17  ;;  %v618_v12 = vpop.f32.mrf.mxu1  ;;  %v1324_v54 = vpop.f32.mrf.mxu0  ;;  %v838_v49 = vrot.slane %v614_v37, 3  ;;  %v881_v56 = vrot.slane %v664_v39, 4 }
 0x116   : > { %v782_v0 = vrot.slane %v618_v12, 2  ;;  %v1781_v24 = vadd.f32 %v798_v48, %v771_v8  ;;  %v1783_v42 = vadd.f32 %v806_v55, %v772_v53  ;;  %v876_v14 = vrot.slane %v1324_v54, 4 }
 0x117   : > { %v926_v58 = vadd.f32 %v1756_v44, %v908_v30  ;;  %v927_v13 = vadd.f32 %v1761_v45, %v909_v47  ;;  %v620_v59 = vpop.f32.mrf.mxu1  ;;  %v677_v17 = vpop.f32.mrf.mxu0  ;;  %v890_v63 = vsel %vm889_vm5, %v873_v46, %v881_v56  ;;  %v898_v16 = vsel %vm889_vm5, %v881_v56, %v873_v46 }
 0x118   : > { %v906_v2 = vadd.f32 %v890_v63, %v1657_v3  ;;  %v1788_v11 = vsel %vm840_vm4, %v830_v19, %v838_v49  ;;  %v907_v10 = vadd.f32 %v898_v16, %v1659_v5  ;;  %v831_v22 = vrot.slane %v620_v59, 3  ;;  %v1824_v63 = vld [vmem:[%s1883_s3] ss:$0 sm:$0xff] }
 0x119   : > { %v947_v52 = vmax.f32 %v926_v58, %v927_v13  ;;  %v622_v6 = vpop.f32.mrf.mxu1  ;;  %v1325_v9 = vpop.f32.mrf.mxu0  ;;  %v1799_v5 = vsel %vm840_vm4, %v838_v49, %v830_v19  ;;  %v875_v34 = vrot.slane %v677_v17, 4 }
 0x11a   : > { %v790_v15 = vrot.slane %v622_v6, 2  ;;  %v924_v4 = vadd.f32 %v1756_v44, %v906_v2  ;;  %v884_v23 = vrot.slane %v1325_v9, 4  ;;  %v925_v29 = vadd.f32 %v1761_v45, %v907_v10 }
 0x11b   : > { %v948_v60 = vrot.slane %v947_v52, 4  ;;  %v624_v27 = vpop.f32.mrf.mxu1  ;;  %v680_v28 = vpop.f32.mrf.mxu0 }
 0x11c   : > { %v799_v3 = vsel %vm791_vm3, %v782_v0, %v790_v15  ;;  %v807_v31 = vsel %vm791_vm3, %v790_v15, %v782_v0  ;;  %v839_v32 = vrot.slane %v624_v27, 3  ;;  %v893_v35 = vsel %vm889_vm5, %v876_v14, %v884_v23 }
 0x11d   : > { %v949_v38 = vmax.f32 %v947_v52, %v948_v60  ;;  %v1328_v20 = vpop.f32.mrf.mxu0  ;;  %v940_v36 = vmax.f32 %v924_v4, %v925_v29  ;;  %v822_v61 = vadd.f32 %v799_v3, %v1574_v50  ;;  %v901_v37 = vsel %vm889_vm5, %v884_v23, %v876_v14 }
 0x11e   : > { %v912_v39 = vadd.f32 %v893_v35, %v1723_v7  ;;  %v823_v41 = vadd.f32 %v807_v31, %v1576_v51  ;;  %v913_v21 = vadd.f32 %v901_v37, %v1728_v18  ;;  %v848_v43 = vsel %vm840_vm4, %v831_v22, %v839_v32 }
 0x11f   : > { %v950_v8 = vrot.slane %v949_v38, 2  ;;  %v693_v19 = vpop.f32.mrf.mxu0  ;;  %v941_v46 = vrot.slane %v940_v36, 4  ;;  %v856_v50 = vsel %vm840_vm4, %v839_v32, %v831_v22  ;;  %v883_v47 = vrot.slane %v680_v28, 4 }
 0x120   : > { %v930_v30 = vadd.f32 %v1756_v44, %v912_v39  ;;  %v931_v54 = vadd.f32 %v1761_v45, %v913_v21  ;;  %v878_v7 = vrot.slane %v1328_v20, 4  ;;  %v877_v48 = vrot.slane %v693_v19, 4 }
 0x121   : > { %v951_v12 = vmax.f32 %v949_v38, %v950_v8  ;;  %v1329_v55 = vpop.f32.mrf.mxu0  ;;  %v942_v51 = vmax.f32 %v940_v36, %v941_v46  ;;  %v892_v18 = vsel %vm889_vm5, %v875_v34, %v883_v47  ;;  %v900_v49 = vsel %vm889_vm5, %v883_v47, %v875_v34 }
 0x122   : > { %v886_v56 = vrot.slane %v1329_v55, 4  ;;  %v961_v58 = vmax.f32 %v930_v30, %v931_v54  ;;  %v910_v13 = vadd.f32 %v892_v18, %v1696_v40  ;;  %v911_v59 = vadd.f32 %v900_v49, %v1715_v1 }
 0x123   : > { %v952_v53 = vrot.slane %v951_v12, 1  ;;  %v696_v17 = vpop.f32.mrf.mxu0  ;;  %v943_v16 = vrot.slane %v942_v51, 2  ;;  %v871_v37 = vadd.f32 %v848_v43, %v822_v61  ;;  %v872_v19 = vadd.f32 %v856_v50, %v823_v41 }
 0x124   : > { %v895_v0 = vsel %vm889_vm5, %v878_v7, %v886_v56  ;;  %v903_v52 = vsel %vm889_vm5, %v886_v56, %v878_v7  ;;  %v885_v2 = vrot.slane %v696_v17, 4  ;;  %v962_v9 = vrot.slane %v961_v58, 4 }
 0x125   : > { %v953_v6 = vmax.f32 %v951_v12, %v952_v53  ;;  %v928_v40 = vadd.f32 %v1756_v44, %v910_v13  ;;  %v929_v1 = vadd.f32 %v1761_v45, %v911_v59  ;;  %v1332_v10 = vpop.f32.mrf.mxu0  ;;  %v944_v14 = vmax.f32 %v942_v51, %v943_v16 }
 0x126   : > { %v916_v15 = vadd.f32 %v895_v0, %v1771_v57  ;;  %v917_v60 = vadd.f32 %v903_v52, %v1775_v62  ;;  %v894_v4 = vsel %vm889_vm5, %v877_v48, %v885_v2  ;;  %v963_v23 = vmax.f32 %v961_v58, %v962_v9 }
 0x127   : > { %v1004_v22 = vadd.f32 %v1824_v63, %v953_v6  ;;  %v954_v27 = vmax.f32 %v928_v40, %v929_v1  ;;  %v902_v28 = vsel %vm889_vm5, %v885_v2, %v877_v48  ;;  %v709_v29 = vpop.f32.mrf.mxu0  ;;  %v945_v3 = vrot.slane %v944_v14, 1 }
 0x128   : > { %v934_v31 = vadd.f32 %v1756_v44, %v916_v15  ;;  %v935_v32 = vadd.f32 %v1761_v45, %v917_v60  ;;  %v914_v57 = vadd.f32 %v894_v4, %v1736_v25  ;;  %v964_v62 = vrot.slane %v963_v23, 2 }
 0x129   : > { %v1012_v38 = vmax.f32 %v1004_v22, 0.0  ;;  %v955_v34 = vrot.slane %v954_v27, 4  ;;  %v915_v35 = vadd.f32 %v902_v28, %v1738_v26  ;;  %v1333_v20 = vpop.f32.mrf.mxu0  ;;  %v946_v36 = vmax.f32 %v944_v14, %v945_v3 }
 0x12a   : > { %v975_v39 = vmax.f32 %v934_v31, %v935_v32  ;;  %v932_v8 = vadd.f32 %v1756_v44, %v914_v57  ;;  %v880_v12 = vrot.slane %v1332_v10, 4  ;;  %v888_v54 = vrot.slane %v1333_v20, 4 }
 0x12b   : > { %v1020_v21 = vpack.c.bf16 %v1012_v38, %v1012_v38  ;;  %v956_v46 = vmax.f32 %v954_v27, %v955_v34  ;;  %v933_v30 = vadd.f32 %v1761_v45, %v915_v35  ;;  %v1003_v47 = vadd.f32 %v1824_v63, %v946_v36  ;;  %v712_v43 = vpop.f32.mrf.mxu0 }
 0x12c   : > { %v976_v25 = vrot.slane %v975_v39, 4  ;;  %v965_v48 = vmax.f32 %v963_v23, %v964_v62  ;;  %v897_v61 = vsel %vm889_vm5, %v880_v12, %v888_v54  ;;  %v905_v41 = vsel %vm889_vm5, %v888_v54, %v880_v12 }
 0x12d   : > { %v1059_v7 = vunpack.c.l.b16 %v1020_v21  ;;  %v957_v55 = vrot.slane %v956_v46, 2  ;;  %v968_v26 = vmax.f32 %v932_v8, %v933_v30  ;;  %v1011_v51 = vmax.f32 %v1003_v47, 0.0 }
 0x12e   : > { %v977_v18 = vmax.f32 %v975_v39, %v976_v25  ;;  %v869_v49 = vadd.f32 %v1788_v11, %v1781_v24  ;;  %v920_v59 = vadd.f32 %v897_v61, %v871_v37  ;;  %v921_v17 = vadd.f32 %v905_v41, %v872_v19 }
 0x12f   : > { %v1066_v50 = vrot.slane %v1059_v7, 7  ;;  %v958_v56 = vmax.f32 %v956_v46, %v957_v55  ;;  %v969_v53 = vrot.slane %v968_v26, 4  ;;  %v1019_v58 = vpack.c.bf16 %v1011_v51, %v1011_v51 }
 0x130   : > { %v978_v13 = vrot.slane %v977_v18, 2  ;;  %v879_v52 = vrot.slane %v709_v29, 4  ;;  %v887_v2 = vrot.slane %v712_v43, 4  ;;  %v966_v9 = vrot.slane %v965_v48, 1 }
 0x131   : > { %v959_v16 = vrot.slane %v958_v56, 1  ;;  %v970_v0 = vmax.f32 %v968_v26, %v969_v53  ;;  %v1058_v6 = vunpack.c.l.b16 %v1019_v58  ;;  %v938_v40 = vadd.f32 %v1756_v44, %v920_v59 }
 0x132   : > { %v939_v1 = vadd.f32 %v1761_v45, %v921_v17  ;;  %v979_v14 = vmax.f32 %v977_v18, %v978_v13  ;;  %v896_v24 = vsel %vm889_vm5, %v879_v52, %v887_v2  ;;  %v870_v11 = vadd.f32 %v1799_v5, %v1783_v42 }
 0x133   : > { %v960_v10 = vmax.f32 %v958_v56, %v959_v16  ;;  %v971_v15 = vrot.slane %v970_v0, 2  ;;  %v1068_v60 = vsel %vm1067_vm6, %v1066_v50, %v1058_v6  ;;  %v904_v22 = vsel %vm889_vm5, %v887_v2, %v879_v52 }
 0x134   : > { %v989_v4 = vmax.f32 %v938_v40, %v939_v1  ;;  %v918_v27 = vadd.f32 %v896_v24, %v869_v49  ;;  %v919_v3 = vadd.f32 %v904_v22, %v870_v11  ;;  %v967_v31 = vmax.f32 %v965_v48, %v966_v9  ;;  %v1283_v11 = vld [vmem:[%s1885_s5] ss:$0 sm:$0xff] }
 0x135   : > { %v972_v23 = vmax.f32 %v970_v0, %v971_v15  ;;  %v1005_v28 = vadd.f32 %v1824_v63, %v960_v10  ;;  %v980_v32 = vrot.slane %v979_v14, 1 }
 0x136   : > { %v990_v29 = vrot.slane %v989_v4, 4  ;;  %v936_v38 = vadd.f32 %v1756_v44, %v918_v27  ;;  %v937_v42 = vadd.f32 %v1761_v45, %v919_v3  ;;  %v1006_v33 = vadd.f32 %v1824_v63, %v967_v31 }
 0x137   : > { %v973_v57 = vrot.slane %v972_v23, 1  ;;  %v1013_v34 = vmax.f32 %v1005_v28, 0.0  ;;  %v981_v36 = vmax.f32 %v979_v14, %v980_v32 }
 0x138   : > { %v991_v62 = vmax.f32 %v989_v4, %v990_v29  ;;  %v982_v20 = vmax.f32 %v936_v38, %v937_v42  ;;  %v1014_v47 = vmax.f32 %v1006_v33, 0.0 }
 0x139   : > { %v974_v5 = vmax.f32 %v972_v23, %v973_v57  ;;  %v1021_v21 = vpack.c.bf16 %v1013_v34, %v1013_v34  ;;  %v1008_v44 = vadd.f32 %v1824_v63, %v981_v36 }
 0x13a   : > { %v992_v35 = vrot.slane %v991_v62, 2  ;;  %v983_v8 = vrot.slane %v982_v20, 4  ;;  %v1022_v55 = vpack.c.bf16 %v1014_v47, %v1014_v47 }
 0x13b   : > { %v1007_v37 = vadd.f32 %v1824_v63, %v974_v5  ;;  %v1060_v12 = vunpack.c.l.b16 %v1021_v21  ;;  %v1016_v26 = vmax.f32 %v1008_v44, 0.0 }
 0x13c   : > { %v993_v39 = vmax.f32 %v991_v62, %v992_v35  ;;  %v984_v30 = vmax.f32 %v982_v20, %v983_v8  ;;  %v1061_v50 = vunpack.c.l.b16 %v1022_v55 }
 0x13d   : > { %v1015_v19 = vmax.f32 %v1007_v37, 0.0  ;;  %v1069_v61 = vrot.slane %v1060_v12, 6  ;;  %v1024_v49 = vpack.c.bf16 %v1016_v26, %v1016_v26 }
 0x13e   : > { %v994_v46 = vrot.slane %v993_v39, 1  ;;  %v985_v45 = vrot.slane %v984_v30, 2  ;;  %v1072_v17 = vrot.slane %v1061_v50, 5 }
 0x13f   : > { %v1023_v54 = vpack.c.bf16 %v1015_v19, %v1015_v19  ;;  %v1071_v59 = vsel %vm1070_vm7, %v1069_v61, %v1068_v60  ;;  %v1063_v16 = vunpack.c.l.b16 %v1024_v49 }
 0x140   : > { %v995_v25 = vmax.f32 %v993_v39, %v994_v46  ;;  %v986_v48 = vmax.f32 %v984_v30, %v985_v45  ;;  %v1074_v2 = vsel %vm1073_vm8, %v1072_v17, %v1071_v59 }
 0x141   : > { %v1062_v41 = vunpack.c.l.b16 %v1023_v54  ;;  %v1078_v40 = vrot.slane %v1063_v16, 3 }
 0x142   : > { %v1010_v7 = vadd.f32 %v1824_v63, %v995_v25  ;;  %v987_v51 = vrot.slane %v986_v48, 1 }
 0x143   : > { %v1075_v58 = vrot.slane %v1062_v41, 4 }
 0x144   : > { %v1018_v18 = vmax.f32 %v1010_v7, 0.0  ;;  %v988_v43 = vmax.f32 %v986_v48, %v987_v51 }
 0x145   : > { %v1077_v9 = vsel %vm1076_vm9, %v1075_v58, %v1074_v2 }
 0x146   : > { %v1009_v56 = vadd.f32 %v1824_v63, %v988_v43  ;;  %v1026_v53 = vpack.c.bf16 %v1018_v18, %v1018_v18  ;;  %v1080_v63 = vsel %vm1079_vm10, %v1078_v40, %v1077_v9 }
 0x148   : > { %v1017_v13 = vmax.f32 %v1009_v56, 0.0  ;;  %v1065_v52 = vunpack.c.l.b16 %v1026_v53 }
 0x14a   : > { %v1025_v0 = vpack.c.bf16 %v1017_v13, %v1017_v13  ;;  %v1084_v10 = vrot.slane %v1065_v52, 1 }
 0x14c   : > { %v1064_v6 = vunpack.c.l.b16 %v1025_v0 }
 0x14e   : > { %v1081_v1 = vrot.slane %v1064_v6, 2 }
 0x150   : > { %v1083_v14 = vsel %vm1082_vm11, %v1081_v1, %v1080_v63 }
 0x151   : > { %v1086_v15 = vsel %vm1085_vm12, %v1084_v10, %v1083_v14 }
 0x152   : > { %v1087_v24 = vpack.c.b16 %v1086_v15, %v1086_v15 }
 0x154   : > { %1351 = vmatmul.mubr.bf16.vlgmr.msra.gmra.mxu1 %v1087_v24 }
 0x214   : > { %v1171_v60 = vpop.f32.mrf.mxu1 }
 0x215   : > { %v1172_v4 = vadd.f32 %v1283_v11, %v1171_v60 }
 0x216   : > { %v1352_v22 = vpop.f32.mrf.mxu1 }
 0x217   : > { %1177 = vst [vmem:[%s254_s7] sm:$0xff] %v1172_v4 }
 0x218   : > { %v1174_v23 = vpop.f32.mrf.mxu1 }
 0x21a   : > { %v1353_v27 = vpop.f32.mrf.mxu1 }
 0x21b PF: > { %s16_s21 = sadd.s32 1, %s1405_s21  }
 0x21c   : > { %p13_p5 = scmp.ge.s32.totalorder %s16_s21, 4  }
 0x21e   :  { %15 = sbr.rel (!%p13_p5) target bundleno = 1 (0x1), region = 74 }

</bundles_post_ra>
